<compile_context>
chip_gen: v6e
topology: v6e:2x2x1
jax: 0.10.0
libtpu: 0.0.40
codegen_flags: <defaults>
</compile_context>

<pallas_src>
import numpy as np
import jax
import jax.numpy as jnp
from jax.experimental import pallas as pl
from jax.experimental.pallas import tpu as pltpu

FEATURE_SIZES = [6, 10, 2, 1, 1, 1, 1, 2, 1, 1, 2, 2]
FIELD_SIZE = 12
TOTAL_FEATURES = int(np.sum(FEATURE_SIZES))  # 30
OFFSETS = np.concatenate([[0], np.cumsum(FEATURE_SIZES)[:-1]]).astype(np.int32)

# Fields whose embedding table has >1 row (only these need an index column).
ACTIVE_FIELDS = [i for i, fs in enumerate(FEATURE_SIZES) if fs > 1]  # [0,1,2,7,10,11]
NF_CAT = len(ACTIVE_FIELDS)                                          # 6

_LANES = 128
_CHUNK_SUBLANES = 8   # process one dense (8,128) vreg of batch elements at a time


def _mle_kernel(idx_ref, w_ref, table_ref, bias_ref, out_ref):
    # idx_ref:   (NF_CAT, S, 128) int32 -- local indices for the 6 categorical fields
    # w_ref:     (FIELD_SIZE, S, 128)   -- per-field weights (any float dtype)
    # table_ref: (TOTAL_FEATURES,) f32  -- all 12 embedding tables flattened, SMEM
    # bias_ref:  (1,) f32               -- scalar bias, SMEM
    # out_ref:   (S, 128) f32           -- dense, lane/sublane-aligned output slab
    s_total = out_ref.shape[0]
    n_chunks = s_total // _CHUNK_SUBLANES

    # Static unroll over 8-sublane chunks; each chunk ends in a full (8,128)
    # store, so only ~5-10 vregs are live at any point (no spills even at
    # large tb).
    for c in range(n_chunks):
        sl = pl.ds(c * _CHUNK_SUBLANES, _CHUNK_SUBLANES)   # static slice
        acc = jnp.full((_CHUNK_SUBLANES, _LANES), bias_ref[0], dtype=jnp.float32)

        cat = 0
        # Static unroll over the 12 fields; feature sizes are compile-time
        # constants, so size-1 fields become scalar FMAs and the rest short
        # select chains against SMEM scalar splats.
        for i, fs in enumerate(FEATURE_SIZES):
            off = int(OFFSETS[i])
            w_i = w_ref[i, sl, :].astype(jnp.float32)       # (8, 128)
            if fs == 1:
                acc = acc + w_i * table_ref[off]
            else:
                idx_i = idx_ref[cat, sl, :]                 # (8, 128) int32
                emb = table_ref[off]                        # scalar (index 0)
                for j in range(1, fs):
                    emb = jnp.where(idx_i == j, table_ref[off + j], emb)
                acc = acc + w_i * emb
                cat += 1

        out_ref[sl, :] = acc


def mle_forward_planar(idx_planar, w_planar, table_flat, bias, tb=8192):
    """Run the kernel on producer-layout inputs.

    idx_planar: (NF_CAT, bp//128, 128) int32  -- batch b at (b//128, b%128)
    w_planar:   (FIELD_SIZE, bp//128, 128) float
    Returns:    (bp,) float32
    """
    assert tb % 1024 == 0, "tb must be a multiple of 1024 (keeps (8,128) alignment)"
    nf_cat, s_total, lanes = idx_planar.shape
    assert nf_cat == NF_CAT and lanes == _LANES
    assert w_planar.shape == (FIELD_SIZE, s_total, _LANES)
    bp = s_total * _LANES
    assert bp % tb == 0, "padded batch must be a multiple of the batch tile"
    st = tb // _LANES                                       # sublane rows per block

    table_flat = jnp.asarray(table_flat, jnp.float32).reshape(TOTAL_FEATURES)
    bias = jnp.asarray(bias, jnp.float32).reshape(1)

    out = pl.pallas_call(
        _mle_kernel,
        out_shape=jax.ShapeDtypeStruct((s_total, _LANES), jnp.float32),
        grid=(bp // tb,),
        in_specs=[
            pl.BlockSpec((NF_CAT, st, _LANES), lambda b: (0, b, 0)),      # indices
            pl.BlockSpec((FIELD_SIZE, st, _LANES), lambda b: (0, b, 0)),  # weights
            pl.BlockSpec(memory_space=pltpu.MemorySpace.SMEM),            # flat table
            pl.BlockSpec(memory_space=pltpu.MemorySpace.SMEM),            # bias
        ],
        out_specs=pl.BlockSpec((st, _LANES), lambda b: (b, 0)),
        compiler_params=pltpu.CompilerParams(
            dimension_semantics=("parallel",)),
    )(idx_planar, w_planar, table_flat, bias)
    return out.reshape(bp)


def to_planar(x_idx, weight, tb):
    """Demo-only layout plumbing: (B, 12) -> kernel planar layout.

    A real producer should emit this layout directly so this extra HBM pass
    (and the pad) disappears end-to-end.
    """
    B = x_idx.shape[0]
    bp = pl.cdiv(B, tb) * tb
    idx_cat = jnp.asarray(x_idx, jnp.int32)[:, np.array(ACTIVE_FIELDS)]   # (B, 6)
    idx_p = jnp.zeros((NF_CAT, bp), jnp.int32).at[:, :B].set(idx_cat.T)
    idx_p = idx_p.reshape(NF_CAT, bp // _LANES, _LANES)
    w_p = jnp.zeros((FIELD_SIZE, bp), jnp.float32).at[:, :B].set(
        jnp.asarray(weight, jnp.float32).T)
    w_p = w_p.reshape(FIELD_SIZE, bp // _LANES, _LANES)
    return idx_p, w_p, B


def mle_forward(x_idx, weight, table_flat, bias, tb=8192):
    """PyTorch-shaped interface: x_idx (B,12) int32, weight (B,12) -> (B,) f32."""
    idx_p, w_p, B = to_planar(x_idx, weight, tb)
    out = mle_forward_planar(idx_p, w_p, table_flat, bias, tb=tb)
    return out[:B]


def init_params(key):
    """Deterministic stand-in for the module's randn-initialized parameters."""
    keys = jax.random.split(key, len(FEATURE_SIZES) + 2)
    tables = [jax.random.normal(keys[i], (fs,), dtype=jnp.float32)
              for i, fs in enumerate(FEATURE_SIZES)]
    table_flat = jnp.concatenate(tables)                    # (TOTAL_FEATURES,)
    bias = jax.random.normal(keys[-2], (1,), dtype=jnp.float32)
    # no_purchse parameter exists in __init__ but is unused in forward().
    _no_purchase = jax.random.normal(keys[-1], (1,), dtype=jnp.float32)
    return table_flat, bias, _no_purchase


def reference_forward(x_idx, weight, table_flat, bias):
    gidx = np.asarray(x_idx) + OFFSETS[None, :]
    emb = np.asarray(table_flat).reshape(-1)[gidx]          # (B, F)
    return (np.asarray(weight) * emb).sum(axis=1) + np.asarray(bias)[0]


if __name__ == "__main__":
    key = jax.random.PRNGKey(0)
    k_param, k_idx, k_w = jax.random.split(key, 3)

    # Small demo: batch is deliberately not a tile multiple, and small enough
    # that the script is instant, while tb=2048 still exercises a multi-step
    # grid (3 tiles) plus tail padding.
    batch = 4500
    tb = 2048

    table_flat, bias, _ = init_params(k_param)

    # Categorical inputs: each field i draws from [0, feature_sizes[i]).
    idx_keys = jax.random.split(k_idx, FIELD_SIZE)
    cols = [jax.random.randint(idx_keys[i], (batch,), 0, FEATURE_SIZES[i],
                               dtype=jnp.int32)
            for i in range(FIELD_SIZE)]
    x_idx = jnp.stack(cols, axis=1)                         # (batch, 12) int32
    weight = jax.random.normal(k_w, (batch, FIELD_SIZE), dtype=jnp.float32)

    out = mle_forward(x_idx, weight, table_flat, bias, tb=tb)
    out = jax.block_until_ready(out)

    ref = reference_forward(x_idx, weight, table_flat, bias)
    np.testing.assert_allclose(np.asarray(out), ref, rtol=1e-5, atol=1e-5)
    assert out.shape == (batch,)
    print("KERNEL_OK")
</pallas_src>

<mosaic_0001>
module attributes {stable_mosaic.version = 11 : i64} {
  func.func @_mle_kernel(%arg0: i32, %arg1: memref<6x16x128xi32, #tpu.memory_space<vmem>>, %arg2: memref<12x16x128xf32, #tpu.memory_space<vmem>>, %arg3: memref<30xf32, #tpu.memory_space<smem>>, %arg4: memref<1xf32, #tpu.memory_space<smem>>, %arg5: memref<16x128xf32, #tpu.memory_space<vmem>>) attributes {dimension_semantics = [#tpu.dimension_semantics<parallel>], iteration_bounds = array<i64: 3>, scalar_prefetch = 0 : i64, scratch_operands = 0 : i64, tpu.core_type = #tpu.core_type<tc>, window_params = [{transform_indices = @transform_0, window_bounds = array<i64: 6, 16, 128>}, {transform_indices = @transform_1, window_bounds = array<i64: 12, 16, 128>}, {transform_indices = @transform_2, window_bounds = array<i64: 30>}, {transform_indices = @transform_3, window_bounds = array<i64: 1>}, {transform_indices = @transform_4, window_bounds = array<i64: 16, 128>}]} {
    %c0 = arith.constant 0 : index
    %0 = memref.load %arg4[%c0] : memref<1xf32, #tpu.memory_space<smem>>
    %1 = vector.broadcast %0 : f32 to vector<8x128xf32>
    %c0_0 = arith.constant 0 : index
    %c0_1 = arith.constant 0 : index
    %c0_2 = arith.constant 0 : index
    %2 = vector.load %arg2[%c0_0, %c0_1, %c0_2] : memref<12x16x128xf32, #tpu.memory_space<vmem>>, vector<1x8x128xf32>
    %3 = vector.shape_cast %2 : vector<1x8x128xf32> to vector<8x128xf32>
    %c0_3 = arith.constant 0 : index
    %c0_4 = arith.constant 0 : index
    %c0_5 = arith.constant 0 : index
    %4 = vector.load %arg1[%c0_3, %c0_4, %c0_5] : memref<6x16x128xi32, #tpu.memory_space<vmem>>, vector<1x8x128xi32>
    %5 = vector.shape_cast %4 : vector<1x8x128xi32> to vector<8x128xi32>
    %c0_6 = arith.constant 0 : index
    %6 = memref.load %arg3[%c0_6] : memref<30xf32, #tpu.memory_space<smem>>
    %c1_i32 = arith.constant 1 : i32
    %7 = vector.broadcast %c1_i32 : i32 to vector<8x128xi32>
    %8 = arith.cmpi eq, %5, %7 : vector<8x128xi32>
    %c1 = arith.constant 1 : index
    %9 = memref.load %arg3[%c1] : memref<30xf32, #tpu.memory_space<smem>>
    %10 = vector.broadcast %9 : f32 to vector<8x128xf32>
    %11 = vector.broadcast %6 : f32 to vector<8x128xf32>
    %12 = arith.select %8, %10, %11 : vector<8x128xi1>, vector<8x128xf32>
    %c2_i32 = arith.constant 2 : i32
    %13 = vector.broadcast %c2_i32 : i32 to vector<8x128xi32>
    %14 = arith.cmpi eq, %5, %13 : vector<8x128xi32>
    %c2 = arith.constant 2 : index
    %15 = memref.load %arg3[%c2] : memref<30xf32, #tpu.memory_space<smem>>
    %16 = vector.broadcast %15 : f32 to vector<8x128xf32>
    %17 = arith.select %14, %16, %12 : vector<8x128xi1>, vector<8x128xf32>
    %c3_i32 = arith.constant 3 : i32
    %18 = vector.broadcast %c3_i32 : i32 to vector<8x128xi32>
    %19 = arith.cmpi eq, %5, %18 : vector<8x128xi32>
    %c3 = arith.constant 3 : index
    %20 = memref.load %arg3[%c3] : memref<30xf32, #tpu.memory_space<smem>>
    %21 = vector.broadcast %20 : f32 to vector<8x128xf32>
    %22 = arith.select %19, %21, %17 : vector<8x128xi1>, vector<8x128xf32>
    %c4_i32 = arith.constant 4 : i32
    %23 = vector.broadcast %c4_i32 : i32 to vector<8x128xi32>
    %24 = arith.cmpi eq, %5, %23 : vector<8x128xi32>
    %c4 = arith.constant 4 : index
    %25 = memref.load %arg3[%c4] : memref<30xf32, #tpu.memory_space<smem>>
    %26 = vector.broadcast %25 : f32 to vector<8x128xf32>
    %27 = arith.select %24, %26, %22 : vector<8x128xi1>, vector<8x128xf32>
    %c5_i32 = arith.constant 5 : i32
    %28 = vector.broadcast %c5_i32 : i32 to vector<8x128xi32>
    %29 = arith.cmpi eq, %5, %28 : vector<8x128xi32>
    %c5 = arith.constant 5 : index
    %30 = memref.load %arg3[%c5] : memref<30xf32, #tpu.memory_space<smem>>
    %31 = vector.broadcast %30 : f32 to vector<8x128xf32>
    %32 = arith.select %29, %31, %27 : vector<8x128xi1>, vector<8x128xf32>
    %33 = arith.mulf %3, %32 : vector<8x128xf32>
    %34 = arith.addf %1, %33 : vector<8x128xf32>
    %c1_7 = arith.constant 1 : index
    %c0_8 = arith.constant 0 : index
    %c0_9 = arith.constant 0 : index
    %35 = vector.load %arg2[%c1_7, %c0_8, %c0_9] : memref<12x16x128xf32, #tpu.memory_space<vmem>>, vector<1x8x128xf32>
    %36 = vector.shape_cast %35 : vector<1x8x128xf32> to vector<8x128xf32>
    %c1_10 = arith.constant 1 : index
    %c0_11 = arith.constant 0 : index
    %c0_12 = arith.constant 0 : index
    %37 = vector.load %arg1[%c1_10, %c0_11, %c0_12] : memref<6x16x128xi32, #tpu.memory_space<vmem>>, vector<1x8x128xi32>
    %38 = vector.shape_cast %37 : vector<1x8x128xi32> to vector<8x128xi32>
    %c6 = arith.constant 6 : index
    %39 = memref.load %arg3[%c6] : memref<30xf32, #tpu.memory_space<smem>>
    %c1_i32_13 = arith.constant 1 : i32
    %40 = vector.broadcast %c1_i32_13 : i32 to vector<8x128xi32>
    %41 = arith.cmpi eq, %38, %40 : vector<8x128xi32>
    %c7 = arith.constant 7 : index
    %42 = memref.load %arg3[%c7] : memref<30xf32, #tpu.memory_space<smem>>
    %43 = vector.broadcast %42 : f32 to vector<8x128xf32>
    %44 = vector.broadcast %39 : f32 to vector<8x128xf32>
    %45 = arith.select %41, %43, %44 : vector<8x128xi1>, vector<8x128xf32>
    %c2_i32_14 = arith.constant 2 : i32
    %46 = vector.broadcast %c2_i32_14 : i32 to vector<8x128xi32>
    %47 = arith.cmpi eq, %38, %46 : vector<8x128xi32>
    %c8 = arith.constant 8 : index
    %48 = memref.load %arg3[%c8] : memref<30xf32, #tpu.memory_space<smem>>
    %49 = vector.broadcast %48 : f32 to vector<8x128xf32>
    %50 = arith.select %47, %49, %45 : vector<8x128xi1>, vector<8x128xf32>
    %c3_i32_15 = arith.constant 3 : i32
    %51 = vector.broadcast %c3_i32_15 : i32 to vector<8x128xi32>
    %52 = arith.cmpi eq, %38, %51 : vector<8x128xi32>
    %c9 = arith.constant 9 : index
    %53 = memref.load %arg3[%c9] : memref<30xf32, #tpu.memory_space<smem>>
    %54 = vector.broadcast %53 : f32 to vector<8x128xf32>
    %55 = arith.select %52, %54, %50 : vector<8x128xi1>, vector<8x128xf32>
    %c4_i32_16 = arith.constant 4 : i32
    %56 = vector.broadcast %c4_i32_16 : i32 to vector<8x128xi32>
    %57 = arith.cmpi eq, %38, %56 : vector<8x128xi32>
    %c10 = arith.constant 10 : index
    %58 = memref.load %arg3[%c10] : memref<30xf32, #tpu.memory_space<smem>>
    %59 = vector.broadcast %58 : f32 to vector<8x128xf32>
    %60 = arith.select %57, %59, %55 : vector<8x128xi1>, vector<8x128xf32>
    %c5_i32_17 = arith.constant 5 : i32
    %61 = vector.broadcast %c5_i32_17 : i32 to vector<8x128xi32>
    %62 = arith.cmpi eq, %38, %61 : vector<8x128xi32>
    %c11 = arith.constant 11 : index
    %63 = memref.load %arg3[%c11] : memref<30xf32, #tpu.memory_space<smem>>
    %64 = vector.broadcast %63 : f32 to vector<8x128xf32>
    %65 = arith.select %62, %64, %60 : vector<8x128xi1>, vector<8x128xf32>
    %c6_i32 = arith.constant 6 : i32
    %66 = vector.broadcast %c6_i32 : i32 to vector<8x128xi32>
    %67 = arith.cmpi eq, %38, %66 : vector<8x128xi32>
    %c12 = arith.constant 12 : index
    %68 = memref.load %arg3[%c12] : memref<30xf32, #tpu.memory_space<smem>>
    %69 = vector.broadcast %68 : f32 to vector<8x128xf32>
    %70 = arith.select %67, %69, %65 : vector<8x128xi1>, vector<8x128xf32>
    %c7_i32 = arith.constant 7 : i32
    %71 = vector.broadcast %c7_i32 : i32 to vector<8x128xi32>
    %72 = arith.cmpi eq, %38, %71 : vector<8x128xi32>
    %c13 = arith.constant 13 : index
    %73 = memref.load %arg3[%c13] : memref<30xf32, #tpu.memory_space<smem>>
    %74 = vector.broadcast %73 : f32 to vector<8x128xf32>
    %75 = arith.select %72, %74, %70 : vector<8x128xi1>, vector<8x128xf32>
    %c8_i32 = arith.constant 8 : i32
    %76 = vector.broadcast %c8_i32 : i32 to vector<8x128xi32>
    %77 = arith.cmpi eq, %38, %76 : vector<8x128xi32>
    %c14 = arith.constant 14 : index
    %78 = memref.load %arg3[%c14] : memref<30xf32, #tpu.memory_space<smem>>
    %79 = vector.broadcast %78 : f32 to vector<8x128xf32>
    %80 = arith.select %77, %79, %75 : vector<8x128xi1>, vector<8x128xf32>
    %c9_i32 = arith.constant 9 : i32
    %81 = vector.broadcast %c9_i32 : i32 to vector<8x128xi32>
    %82 = arith.cmpi eq, %38, %81 : vector<8x128xi32>
    %c15 = arith.constant 15 : index
    %83 = memref.load %arg3[%c15] : memref<30xf32, #tpu.memory_space<smem>>
    %84 = vector.broadcast %83 : f32 to vector<8x128xf32>
    %85 = arith.select %82, %84, %80 : vector<8x128xi1>, vector<8x128xf32>
    %86 = arith.mulf %36, %85 : vector<8x128xf32>
    %87 = arith.addf %34, %86 : vector<8x128xf32>
    %c2_18 = arith.constant 2 : index
    %c0_19 = arith.constant 0 : index
    %c0_20 = arith.constant 0 : index
    %88 = vector.load %arg2[%c2_18, %c0_19, %c0_20] : memref<12x16x128xf32, #tpu.memory_space<vmem>>, vector<1x8x128xf32>
    %89 = vector.shape_cast %88 : vector<1x8x128xf32> to vector<8x128xf32>
    %c2_21 = arith.constant 2 : index
    %c0_22 = arith.constant 0 : index
    %c0_23 = arith.constant 0 : index
    %90 = vector.load %arg1[%c2_21, %c0_22, %c0_23] : memref<6x16x128xi32, #tpu.memory_space<vmem>>, vector<1x8x128xi32>
    %91 = vector.shape_cast %90 : vector<1x8x128xi32> to vector<8x128xi32>
    %c16 = arith.constant 16 : index
    %92 = memref.load %arg3[%c16] : memref<30xf32, #tpu.memory_space<smem>>
    %c1_i32_24 = arith.constant 1 : i32
    %93 = vector.broadcast %c1_i32_24 : i32 to vector<8x128xi32>
    %94 = arith.cmpi eq, %91, %93 : vector<8x128xi32>
    %c17 = arith.constant 17 : index
    %95 = memref.load %arg3[%c17] : memref<30xf32, #tpu.memory_space<smem>>
    %96 = vector.broadcast %95 : f32 to vector<8x128xf32>
    %97 = vector.broadcast %92 : f32 to vector<8x128xf32>
    %98 = arith.select %94, %96, %97 : vector<8x128xi1>, vector<8x128xf32>
    %99 = arith.mulf %89, %98 : vector<8x128xf32>
    %100 = arith.addf %87, %99 : vector<8x128xf32>
    %c3_25 = arith.constant 3 : index
    %c0_26 = arith.constant 0 : index
    %c0_27 = arith.constant 0 : index
    %101 = vector.load %arg2[%c3_25, %c0_26, %c0_27] : memref<12x16x128xf32, #tpu.memory_space<vmem>>, vector<1x8x128xf32>
    %102 = vector.shape_cast %101 : vector<1x8x128xf32> to vector<8x128xf32>
    %c18 = arith.constant 18 : index
    %103 = memref.load %arg3[%c18] : memref<30xf32, #tpu.memory_space<smem>>
    %104 = vector.broadcast %103 : f32 to vector<8x128xf32>
    %105 = arith.mulf %102, %104 : vector<8x128xf32>
    %106 = arith.addf %100, %105 : vector<8x128xf32>
    %c4_28 = arith.constant 4 : index
    %c0_29 = arith.constant 0 : index
    %c0_30 = arith.constant 0 : index
    %107 = vector.load %arg2[%c4_28, %c0_29, %c0_30] : memref<12x16x128xf32, #tpu.memory_space<vmem>>, vector<1x8x128xf32>
    %108 = vector.shape_cast %107 : vector<1x8x128xf32> to vector<8x128xf32>
    %c19 = arith.constant 19 : index
    %109 = memref.load %arg3[%c19] : memref<30xf32, #tpu.memory_space<smem>>
    %110 = vector.broadcast %109 : f32 to vector<8x128xf32>
    %111 = arith.mulf %108, %110 : vector<8x128xf32>
    %112 = arith.addf %106, %111 : vector<8x128xf32>
    %c5_31 = arith.constant 5 : index
    %c0_32 = arith.constant 0 : index
    %c0_33 = arith.constant 0 : index
    %113 = vector.load %arg2[%c5_31, %c0_32, %c0_33] : memref<12x16x128xf32, #tpu.memory_space<vmem>>, vector<1x8x128xf32>
    %114 = vector.shape_cast %113 : vector<1x8x128xf32> to vector<8x128xf32>
    %c20 = arith.constant 20 : index
    %115 = memref.load %arg3[%c20] : memref<30xf32, #tpu.memory_space<smem>>
    %116 = vector.broadcast %115 : f32 to vector<8x128xf32>
    %117 = arith.mulf %114, %116 : vector<8x128xf32>
    %118 = arith.addf %112, %117 : vector<8x128xf32>
    %c6_34 = arith.constant 6 : index
    %c0_35 = arith.constant 0 : index
    %c0_36 = arith.constant 0 : index
    %119 = vector.load %arg2[%c6_34, %c0_35, %c0_36] : memref<12x16x128xf32, #tpu.memory_space<vmem>>, vector<1x8x128xf32>
    %120 = vector.shape_cast %119 : vector<1x8x128xf32> to vector<8x128xf32>
    %c21 = arith.constant 21 : index
    %121 = memref.load %arg3[%c21] : memref<30xf32, #tpu.memory_space<smem>>
    %122 = vector.broadcast %121 : f32 to vector<8x128xf32>
    %123 = arith.mulf %120, %122 : vector<8x128xf32>
    %124 = arith.addf %118, %123 : vector<8x128xf32>
    %c7_37 = arith.constant 7 : index
    %c0_38 = arith.constant 0 : index
    %c0_39 = arith.constant 0 : index
    %125 = vector.load %arg2[%c7_37, %c0_38, %c0_39] : memref<12x16x128xf32, #tpu.memory_space<vmem>>, vector<1x8x128xf32>
    %126 = vector.shape_cast %125 : vector<1x8x128xf32> to vector<8x128xf32>
    %c3_40 = arith.constant 3 : index
    %c0_41 = arith.constant 0 : index
    %c0_42 = arith.constant 0 : index
    %127 = vector.load %arg1[%c3_40, %c0_41, %c0_42] : memref<6x16x128xi32, #tpu.memory_space<vmem>>, vector<1x8x128xi32>
    %128 = vector.shape_cast %127 : vector<1x8x128xi32> to vector<8x128xi32>
    %c22 = arith.constant 22 : index
    %129 = memref.load %arg3[%c22] : memref<30xf32, #tpu.memory_space<smem>>
    %c1_i32_43 = arith.constant 1 : i32
    %130 = vector.broadcast %c1_i32_43 : i32 to vector<8x128xi32>
    %131 = arith.cmpi eq, %128, %130 : vector<8x128xi32>
    %c23 = arith.constant 23 : index
    %132 = memref.load %arg3[%c23] : memref<30xf32, #tpu.memory_space<smem>>
    %133 = vector.broadcast %132 : f32 to vector<8x128xf32>
    %134 = vector.broadcast %129 : f32 to vector<8x128xf32>
    %135 = arith.select %131, %133, %134 : vector<8x128xi1>, vector<8x128xf32>
    %136 = arith.mulf %126, %135 : vector<8x128xf32>
    %137 = arith.addf %124, %136 : vector<8x128xf32>
    %c8_44 = arith.constant 8 : index
    %c0_45 = arith.constant 0 : index
    %c0_46 = arith.constant 0 : index
    %138 = vector.load %arg2[%c8_44, %c0_45, %c0_46] : memref<12x16x128xf32, #tpu.memory_space<vmem>>, vector<1x8x128xf32>
    %139 = vector.shape_cast %138 : vector<1x8x128xf32> to vector<8x128xf32>
    %c24 = arith.constant 24 : index
    %140 = memref.load %arg3[%c24] : memref<30xf32, #tpu.memory_space<smem>>
    %141 = vector.broadcast %140 : f32 to vector<8x128xf32>
    %142 = arith.mulf %139, %141 : vector<8x128xf32>
    %143 = arith.addf %137, %142 : vector<8x128xf32>
    %c9_47 = arith.constant 9 : index
    %c0_48 = arith.constant 0 : index
    %c0_49 = arith.constant 0 : index
    %144 = vector.load %arg2[%c9_47, %c0_48, %c0_49] : memref<12x16x128xf32, #tpu.memory_space<vmem>>, vector<1x8x128xf32>
    %145 = vector.shape_cast %144 : vector<1x8x128xf32> to vector<8x128xf32>
    %c25 = arith.constant 25 : index
    %146 = memref.load %arg3[%c25] : memref<30xf32, #tpu.memory_space<smem>>
    %147 = vector.broadcast %146 : f32 to vector<8x128xf32>
    %148 = arith.mulf %145, %147 : vector<8x128xf32>
    %149 = arith.addf %143, %148 : vector<8x128xf32>
    %c10_50 = arith.constant 10 : index
    %c0_51 = arith.constant 0 : index
    %c0_52 = arith.constant 0 : index
    %150 = vector.load %arg2[%c10_50, %c0_51, %c0_52] : memref<12x16x128xf32, #tpu.memory_space<vmem>>, vector<1x8x128xf32>
    %151 = vector.shape_cast %150 : vector<1x8x128xf32> to vector<8x128xf32>
    %c4_53 = arith.constant 4 : index
    %c0_54 = arith.constant 0 : index
    %c0_55 = arith.constant 0 : index
    %152 = vector.load %arg1[%c4_53, %c0_54, %c0_55] : memref<6x16x128xi32, #tpu.memory_space<vmem>>, vector<1x8x128xi32>
    %153 = vector.shape_cast %152 : vector<1x8x128xi32> to vector<8x128xi32>
    %c26 = arith.constant 26 : index
    %154 = memref.load %arg3[%c26] : memref<30xf32, #tpu.memory_space<smem>>
    %c1_i32_56 = arith.constant 1 : i32
    %155 = vector.broadcast %c1_i32_56 : i32 to vector<8x128xi32>
    %156 = arith.cmpi eq, %153, %155 : vector<8x128xi32>
    %c27 = arith.constant 27 : index
    %157 = memref.load %arg3[%c27] : memref<30xf32, #tpu.memory_space<smem>>
    %158 = vector.broadcast %157 : f32 to vector<8x128xf32>
    %159 = vector.broadcast %154 : f32 to vector<8x128xf32>
    %160 = arith.select %156, %158, %159 : vector<8x128xi1>, vector<8x128xf32>
    %161 = arith.mulf %151, %160 : vector<8x128xf32>
    %162 = arith.addf %149, %161 : vector<8x128xf32>
    %c11_57 = arith.constant 11 : index
    %c0_58 = arith.constant 0 : index
    %c0_59 = arith.constant 0 : index
    %163 = vector.load %arg2[%c11_57, %c0_58, %c0_59] : memref<12x16x128xf32, #tpu.memory_space<vmem>>, vector<1x8x128xf32>
    %164 = vector.shape_cast %163 : vector<1x8x128xf32> to vector<8x128xf32>
    %c5_60 = arith.constant 5 : index
    %c0_61 = arith.constant 0 : index
    %c0_62 = arith.constant 0 : index
    %165 = vector.load %arg1[%c5_60, %c0_61, %c0_62] : memref<6x16x128xi32, #tpu.memory_space<vmem>>, vector<1x8x128xi32>
    %166 = vector.shape_cast %165 : vector<1x8x128xi32> to vector<8x128xi32>
    %c28 = arith.constant 28 : index
    %167 = memref.load %arg3[%c28] : memref<30xf32, #tpu.memory_space<smem>>
    %c1_i32_63 = arith.constant 1 : i32
    %168 = vector.broadcast %c1_i32_63 : i32 to vector<8x128xi32>
    %169 = arith.cmpi eq, %166, %168 : vector<8x128xi32>
    %c29 = arith.constant 29 : index
    %170 = memref.load %arg3[%c29] : memref<30xf32, #tpu.memory_space<smem>>
    %171 = vector.broadcast %170 : f32 to vector<8x128xf32>
    %172 = vector.broadcast %167 : f32 to vector<8x128xf32>
    %173 = arith.select %169, %171, %172 : vector<8x128xi1>, vector<8x128xf32>
    %174 = arith.mulf %164, %173 : vector<8x128xf32>
    %175 = arith.addf %162, %174 : vector<8x128xf32>
    %c0_64 = arith.constant 0 : index
    %c0_65 = arith.constant 0 : index
    %176 = vector.load %arg5[%c0_64, %c0_65] : memref<16x128xf32, #tpu.memory_space<vmem>>, vector<8x128xf32>
    tpu.vector_store %arg5[%c0_64, %c0_65], %175 {strides = array<i32>} : memref<16x128xf32, #tpu.memory_space<vmem>>, vector<8x128xf32>,
    %c0_66 = arith.constant 0 : index
    %177 = memref.load %arg4[%c0_66] : memref<1xf32, #tpu.memory_space<smem>>
    %178 = vector.broadcast %177 : f32 to vector<8x128xf32>
    %c0_67 = arith.constant 0 : index
    %c8_68 = arith.constant 8 : index
    %c0_69 = arith.constant 0 : index
    %179 = vector.load %arg2[%c0_67, %c8_68, %c0_69] : memref<12x16x128xf32, #tpu.memory_space<vmem>>, vector<1x8x128xf32>
    %180 = vector.shape_cast %179 : vector<1x8x128xf32> to vector<8x128xf32>
    %c0_70 = arith.constant 0 : index
    %c8_71 = arith.constant 8 : index
    %c0_72 = arith.constant 0 : index
    %181 = vector.load %arg1[%c0_70, %c8_71, %c0_72] : memref<6x16x128xi32, #tpu.memory_space<vmem>>, vector<1x8x128xi32>
    %182 = vector.shape_cast %181 : vector<1x8x128xi32> to vector<8x128xi32>
    %c0_73 = arith.constant 0 : index
    %183 = memref.load %arg3[%c0_73] : memref<30xf32, #tpu.memory_space<smem>>
    %c1_i32_74 = arith.constant 1 : i32
    %184 = vector.broadcast %c1_i32_74 : i32 to vector<8x128xi32>
    %185 = arith.cmpi eq, %182, %184 : vector<8x128xi32>
    %c1_75 = arith.constant 1 : index
    %186 = memref.load %arg3[%c1_75] : memref<30xf32, #tpu.memory_space<smem>>
    %187 = vector.broadcast %186 : f32 to vector<8x128xf32>
    %188 = vector.broadcast %183 : f32 to vector<8x128xf32>
    %189 = arith.select %185, %187, %188 : vector<8x128xi1>, vector<8x128xf32>
    %c2_i32_76 = arith.constant 2 : i32
    %190 = vector.broadcast %c2_i32_76 : i32 to vector<8x128xi32>
    %191 = arith.cmpi eq, %182, %190 : vector<8x128xi32>
    %c2_77 = arith.constant 2 : index
    %192 = memref.load %arg3[%c2_77] : memref<30xf32, #tpu.memory_space<smem>>
    %193 = vector.broadcast %192 : f32 to vector<8x128xf32>
    %194 = arith.select %191, %193, %189 : vector<8x128xi1>, vector<8x128xf32>
    %c3_i32_78 = arith.constant 3 : i32
    %195 = vector.broadcast %c3_i32_78 : i32 to vector<8x128xi32>
    %196 = arith.cmpi eq, %182, %195 : vector<8x128xi32>
    %c3_79 = arith.constant 3 : index
    %197 = memref.load %arg3[%c3_79] : memref<30xf32, #tpu.memory_space<smem>>
    %198 = vector.broadcast %197 : f32 to vector<8x128xf32>
    %199 = arith.select %196, %198, %194 : vector<8x128xi1>, vector<8x128xf32>
    %c4_i32_80 = arith.constant 4 : i32
    %200 = vector.broadcast %c4_i32_80 : i32 to vector<8x128xi32>
    %201 = arith.cmpi eq, %182, %200 : vector<8x128xi32>
    %c4_81 = arith.constant 4 : index
    %202 = memref.load %arg3[%c4_81] : memref<30xf32, #tpu.memory_space<smem>>
    %203 = vector.broadcast %202 : f32 to vector<8x128xf32>
    %204 = arith.select %201, %203, %199 : vector<8x128xi1>, vector<8x128xf32>
    %c5_i32_82 = arith.constant 5 : i32
    %205 = vector.broadcast %c5_i32_82 : i32 to vector<8x128xi32>
    %206 = arith.cmpi eq, %182, %205 : vector<8x128xi32>
    %c5_83 = arith.constant 5 : index
    %207 = memref.load %arg3[%c5_83] : memref<30xf32, #tpu.memory_space<smem>>
    %208 = vector.broadcast %207 : f32 to vector<8x128xf32>
    %209 = arith.select %206, %208, %204 : vector<8x128xi1>, vector<8x128xf32>
    %210 = arith.mulf %180, %209 : vector<8x128xf32>
    %211 = arith.addf %178, %210 : vector<8x128xf32>
    %c1_84 = arith.constant 1 : index
    %c8_85 = arith.constant 8 : index
    %c0_86 = arith.constant 0 : index
    %212 = vector.load %arg2[%c1_84, %c8_85, %c0_86] : memref<12x16x128xf32, #tpu.memory_space<vmem>>, vector<1x8x128xf32>
    %213 = vector.shape_cast %212 : vector<1x8x128xf32> to vector<8x128xf32>
    %c1_87 = arith.constant 1 : index
    %c8_88 = arith.constant 8 : index
    %c0_89 = arith.constant 0 : index
    %214 = vector.load %arg1[%c1_87, %c8_88, %c0_89] : memref<6x16x128xi32, #tpu.memory_space<vmem>>, vector<1x8x128xi32>
    %215 = vector.shape_cast %214 : vector<1x8x128xi32> to vector<8x128xi32>
    %c6_90 = arith.constant 6 : index
    %216 = memref.load %arg3[%c6_90] : memref<30xf32, #tpu.memory_space<smem>>
    %c1_i32_91 = arith.constant 1 : i32
    %217 = vector.broadcast %c1_i32_91 : i32 to vector<8x128xi32>
    %218 = arith.cmpi eq, %215, %217 : vector<8x128xi32>
    %c7_92 = arith.constant 7 : index
    %219 = memref.load %arg3[%c7_92] : memref<30xf32, #tpu.memory_space<smem>>
    %220 = vector.broadcast %219 : f32 to vector<8x128xf32>
    %221 = vector.broadcast %216 : f32 to vector<8x128xf32>
    %222 = arith.select %218, %220, %221 : vector<8x128xi1>, vector<8x128xf32>
    %c2_i32_93 = arith.constant 2 : i32
    %223 = vector.broadcast %c2_i32_93 : i32 to vector<8x128xi32>
    %224 = arith.cmpi eq, %215, %223 : vector<8x128xi32>
    %c8_94 = arith.constant 8 : index
    %225 = memref.load %arg3[%c8_94] : memref<30xf32, #tpu.memory_space<smem>>
    %226 = vector.broadcast %225 : f32 to vector<8x128xf32>
    %227 = arith.select %224, %226, %222 : vector<8x128xi1>, vector<8x128xf32>
    %c3_i32_95 = arith.constant 3 : i32
    %228 = vector.broadcast %c3_i32_95 : i32 to vector<8x128xi32>
    %229 = arith.cmpi eq, %215, %228 : vector<8x128xi32>
    %c9_96 = arith.constant 9 : index
    %230 = memref.load %arg3[%c9_96] : memref<30xf32, #tpu.memory_space<smem>>
    %231 = vector.broadcast %230 : f32 to vector<8x128xf32>
    %232 = arith.select %229, %231, %227 : vector<8x128xi1>, vector<8x128xf32>
    %c4_i32_97 = arith.constant 4 : i32
    %233 = vector.broadcast %c4_i32_97 : i32 to vector<8x128xi32>
    %234 = arith.cmpi eq, %215, %233 : vector<8x128xi32>
    %c10_98 = arith.constant 10 : index
    %235 = memref.load %arg3[%c10_98] : memref<30xf32, #tpu.memory_space<smem>>
    %236 = vector.broadcast %235 : f32 to vector<8x128xf32>
    %237 = arith.select %234, %236, %232 : vector<8x128xi1>, vector<8x128xf32>
    %c5_i32_99 = arith.constant 5 : i32
    %238 = vector.broadcast %c5_i32_99 : i32 to vector<8x128xi32>
    %239 = arith.cmpi eq, %215, %238 : vector<8x128xi32>
    %c11_100 = arith.constant 11 : index
    %240 = memref.load %arg3[%c11_100] : memref<30xf32, #tpu.memory_space<smem>>
    %241 = vector.broadcast %240 : f32 to vector<8x128xf32>
    %242 = arith.select %239, %241, %237 : vector<8x128xi1>, vector<8x128xf32>
    %c6_i32_101 = arith.constant 6 : i32
    %243 = vector.broadcast %c6_i32_101 : i32 to vector<8x128xi32>
    %244 = arith.cmpi eq, %215, %243 : vector<8x128xi32>
    %c12_102 = arith.constant 12 : index
    %245 = memref.load %arg3[%c12_102] : memref<30xf32, #tpu.memory_space<smem>>
    %246 = vector.broadcast %245 : f32 to vector<8x128xf32>
    %247 = arith.select %244, %246, %242 : vector<8x128xi1>, vector<8x128xf32>
    %c7_i32_103 = arith.constant 7 : i32
    %248 = vector.broadcast %c7_i32_103 : i32 to vector<8x128xi32>
    %249 = arith.cmpi eq, %215, %248 : vector<8x128xi32>
    %c13_104 = arith.constant 13 : index
    %250 = memref.load %arg3[%c13_104] : memref<30xf32, #tpu.memory_space<smem>>
    %251 = vector.broadcast %250 : f32 to vector<8x128xf32>
    %252 = arith.select %249, %251, %247 : vector<8x128xi1>, vector<8x128xf32>
    %c8_i32_105 = arith.constant 8 : i32
    %253 = vector.broadcast %c8_i32_105 : i32 to vector<8x128xi32>
    %254 = arith.cmpi eq, %215, %253 : vector<8x128xi32>
    %c14_106 = arith.constant 14 : index
    %255 = memref.load %arg3[%c14_106] : memref<30xf32, #tpu.memory_space<smem>>
    %256 = vector.broadcast %255 : f32 to vector<8x128xf32>
    %257 = arith.select %254, %256, %252 : vector<8x128xi1>, vector<8x128xf32>
    %c9_i32_107 = arith.constant 9 : i32
    %258 = vector.broadcast %c9_i32_107 : i32 to vector<8x128xi32>
    %259 = arith.cmpi eq, %215, %258 : vector<8x128xi32>
    %c15_108 = arith.constant 15 : index
    %260 = memref.load %arg3[%c15_108] : memref<30xf32, #tpu.memory_space<smem>>
    %261 = vector.broadcast %260 : f32 to vector<8x128xf32>
    %262 = arith.select %259, %261, %257 : vector<8x128xi1>, vector<8x128xf32>
    %263 = arith.mulf %213, %262 : vector<8x128xf32>
    %264 = arith.addf %211, %263 : vector<8x128xf32>
    %c2_109 = arith.constant 2 : index
    %c8_110 = arith.constant 8 : index
    %c0_111 = arith.constant 0 : index
    %265 = vector.load %arg2[%c2_109, %c8_110, %c0_111] : memref<12x16x128xf32, #tpu.memory_space<vmem>>, vector<1x8x128xf32>
    %266 = vector.shape_cast %265 : vector<1x8x128xf32> to vector<8x128xf32>
    %c2_112 = arith.constant 2 : index
    %c8_113 = arith.constant 8 : index
    %c0_114 = arith.constant 0 : index
    %267 = vector.load %arg1[%c2_112, %c8_113, %c0_114] : memref<6x16x128xi32, #tpu.memory_space<vmem>>, vector<1x8x128xi32>
    %268 = vector.shape_cast %267 : vector<1x8x128xi32> to vector<8x128xi32>
    %c16_115 = arith.constant 16 : index
    %269 = memref.load %arg3[%c16_115] : memref<30xf32, #tpu.memory_space<smem>>
    %c1_i32_116 = arith.constant 1 : i32
    %270 = vector.broadcast %c1_i32_116 : i32 to vector<8x128xi32>
    %271 = arith.cmpi eq, %268, %270 : vector<8x128xi32>
    %c17_117 = arith.constant 17 : index
    %272 = memref.load %arg3[%c17_117] : memref<30xf32, #tpu.memory_space<smem>>
    %273 = vector.broadcast %272 : f32 to vector<8x128xf32>
    %274 = vector.broadcast %269 : f32 to vector<8x128xf32>
    %275 = arith.select %271, %273, %274 : vector<8x128xi1>, vector<8x128xf32>
    %276 = arith.mulf %266, %275 : vector<8x128xf32>
    %277 = arith.addf %264, %276 : vector<8x128xf32>
    %c3_118 = arith.constant 3 : index
    %c8_119 = arith.constant 8 : index
    %c0_120 = arith.constant 0 : index
    %278 = vector.load %arg2[%c3_118, %c8_119, %c0_120] : memref<12x16x128xf32, #tpu.memory_space<vmem>>, vector<1x8x128xf32>
    %279 = vector.shape_cast %278 : vector<1x8x128xf32> to vector<8x128xf32>
    %c18_121 = arith.constant 18 : index
    %280 = memref.load %arg3[%c18_121] : memref<30xf32, #tpu.memory_space<smem>>
    %281 = vector.broadcast %280 : f32 to vector<8x128xf32>
    %282 = arith.mulf %279, %281 : vector<8x128xf32>
    %283 = arith.addf %277, %282 : vector<8x128xf32>
    %c4_122 = arith.constant 4 : index
    %c8_123 = arith.constant 8 : index
    %c0_124 = arith.constant 0 : index
    %284 = vector.load %arg2[%c4_122, %c8_123, %c0_124] : memref<12x16x128xf32, #tpu.memory_space<vmem>>, vector<1x8x128xf32>
    %285 = vector.shape_cast %284 : vector<1x8x128xf32> to vector<8x128xf32>
    %c19_125 = arith.constant 19 : index
    %286 = memref.load %arg3[%c19_125] : memref<30xf32, #tpu.memory_space<smem>>
    %287 = vector.broadcast %286 : f32 to vector<8x128xf32>
    %288 = arith.mulf %285, %287 : vector<8x128xf32>
    %289 = arith.addf %283, %288 : vector<8x128xf32>
    %c5_126 = arith.constant 5 : index
    %c8_127 = arith.constant 8 : index
    %c0_128 = arith.constant 0 : index
    %290 = vector.load %arg2[%c5_126, %c8_127, %c0_128] : memref<12x16x128xf32, #tpu.memory_space<vmem>>, vector<1x8x128xf32>
    %291 = vector.shape_cast %290 : vector<1x8x128xf32> to vector<8x128xf32>
    %c20_129 = arith.constant 20 : index
    %292 = memref.load %arg3[%c20_129] : memref<30xf32, #tpu.memory_space<smem>>
    %293 = vector.broadcast %292 : f32 to vector<8x128xf32>
    %294 = arith.mulf %291, %293 : vector<8x128xf32>
    %295 = arith.addf %289, %294 : vector<8x128xf32>
    %c6_130 = arith.constant 6 : index
    %c8_131 = arith.constant 8 : index
    %c0_132 = arith.constant 0 : index
    %296 = vector.load %arg2[%c6_130, %c8_131, %c0_132] : memref<12x16x128xf32, #tpu.memory_space<vmem>>, vector<1x8x128xf32>
    %297 = vector.shape_cast %296 : vector<1x8x128xf32> to vector<8x128xf32>
    %c21_133 = arith.constant 21 : index
    %298 = memref.load %arg3[%c21_133] : memref<30xf32, #tpu.memory_space<smem>>
    %299 = vector.broadcast %298 : f32 to vector<8x128xf32>
    %300 = arith.mulf %297, %299 : vector<8x128xf32>
    %301 = arith.addf %295, %300 : vector<8x128xf32>
    %c7_134 = arith.constant 7 : index
    %c8_135 = arith.constant 8 : index
    %c0_136 = arith.constant 0 : index
    %302 = vector.load %arg2[%c7_134, %c8_135, %c0_136] : memref<12x16x128xf32, #tpu.memory_space<vmem>>, vector<1x8x128xf32>
    %303 = vector.shape_cast %302 : vector<1x8x128xf32> to vector<8x128xf32>
    %c3_137 = arith.constant 3 : index
    %c8_138 = arith.constant 8 : index
    %c0_139 = arith.constant 0 : index
    %304 = vector.load %arg1[%c3_137, %c8_138, %c0_139] : memref<6x16x128xi32, #tpu.memory_space<vmem>>, vector<1x8x128xi32>
    %305 = vector.shape_cast %304 : vector<1x8x128xi32> to vector<8x128xi32>
    %c22_140 = arith.constant 22 : index
    %306 = memref.load %arg3[%c22_140] : memref<30xf32, #tpu.memory_space<smem>>
    %c1_i32_141 = arith.constant 1 : i32
    %307 = vector.broadcast %c1_i32_141 : i32 to vector<8x128xi32>
    %308 = arith.cmpi eq, %305, %307 : vector<8x128xi32>
    %c23_142 = arith.constant 23 : index
    %309 = memref.load %arg3[%c23_142] : memref<30xf32, #tpu.memory_space<smem>>
    %310 = vector.broadcast %309 : f32 to vector<8x128xf32>
    %311 = vector.broadcast %306 : f32 to vector<8x128xf32>
    %312 = arith.select %308, %310, %311 : vector<8x128xi1>, vector<8x128xf32>
    %313 = arith.mulf %303, %312 : vector<8x128xf32>
    %314 = arith.addf %301, %313 : vector<8x128xf32>
    %c8_143 = arith.constant 8 : index
    %c8_144 = arith.constant 8 : index
    %c0_145 = arith.constant 0 : index
    %315 = vector.load %arg2[%c8_143, %c8_144, %c0_145] : memref<12x16x128xf32, #tpu.memory_space<vmem>>, vector<1x8x128xf32>
    %316 = vector.shape_cast %315 : vector<1x8x128xf32> to vector<8x128xf32>
    %c24_146 = arith.constant 24 : index
    %317 = memref.load %arg3[%c24_146] : memref<30xf32, #tpu.memory_space<smem>>
    %318 = vector.broadcast %317 : f32 to vector<8x128xf32>
    %319 = arith.mulf %316, %318 : vector<8x128xf32>
    %320 = arith.addf %314, %319 : vector<8x128xf32>
    %c9_147 = arith.constant 9 : index
    %c8_148 = arith.constant 8 : index
    %c0_149 = arith.constant 0 : index
    %321 = vector.load %arg2[%c9_147, %c8_148, %c0_149] : memref<12x16x128xf32, #tpu.memory_space<vmem>>, vector<1x8x128xf32>
    %322 = vector.shape_cast %321 : vector<1x8x128xf32> to vector<8x128xf32>
    %c25_150 = arith.constant 25 : index
    %323 = memref.load %arg3[%c25_150] : memref<30xf32, #tpu.memory_space<smem>>
    %324 = vector.broadcast %323 : f32 to vector<8x128xf32>
    %325 = arith.mulf %322, %324 : vector<8x128xf32>
    %326 = arith.addf %320, %325 : vector<8x128xf32>
    %c10_151 = arith.constant 10 : index
    %c8_152 = arith.constant 8 : index
    %c0_153 = arith.constant 0 : index
    %327 = vector.load %arg2[%c10_151, %c8_152, %c0_153] : memref<12x16x128xf32, #tpu.memory_space<vmem>>, vector<1x8x128xf32>
    %328 = vector.shape_cast %327 : vector<1x8x128xf32> to vector<8x128xf32>
    %c4_154 = arith.constant 4 : index
    %c8_155 = arith.constant 8 : index
    %c0_156 = arith.constant 0 : index
    %329 = vector.load %arg1[%c4_154, %c8_155, %c0_156] : memref<6x16x128xi32, #tpu.memory_space<vmem>>, vector<1x8x128xi32>
    %330 = vector.shape_cast %329 : vector<1x8x128xi32> to vector<8x128xi32>
    %c26_157 = arith.constant 26 : index
    %331 = memref.load %arg3[%c26_157] : memref<30xf32, #tpu.memory_space<smem>>
    %c1_i32_158 = arith.constant 1 : i32
    %332 = vector.broadcast %c1_i32_158 : i32 to vector<8x128xi32>
    %333 = arith.cmpi eq, %330, %332 : vector<8x128xi32>
    %c27_159 = arith.constant 27 : index
    %334 = memref.load %arg3[%c27_159] : memref<30xf32, #tpu.memory_space<smem>>
    %335 = vector.broadcast %334 : f32 to vector<8x128xf32>
    %336 = vector.broadcast %331 : f32 to vector<8x128xf32>
    %337 = arith.select %333, %335, %336 : vector<8x128xi1>, vector<8x128xf32>
    %338 = arith.mulf %328, %337 : vector<8x128xf32>
    %339 = arith.addf %326, %338 : vector<8x128xf32>
    %c11_160 = arith.constant 11 : index
    %c8_161 = arith.constant 8 : index
    %c0_162 = arith.constant 0 : index
    %340 = vector.load %arg2[%c11_160, %c8_161, %c0_162] : memref<12x16x128xf32, #tpu.memory_space<vmem>>, vector<1x8x128xf32>
    %341 = vector.shape_cast %340 : vector<1x8x128xf32> to vector<8x128xf32>
    %c5_163 = arith.constant 5 : index
    %c8_164 = arith.constant 8 : index
    %c0_165 = arith.constant 0 : index
    %342 = vector.load %arg1[%c5_163, %c8_164, %c0_165] : memref<6x16x128xi32, #tpu.memory_space<vmem>>, vector<1x8x128xi32>
    %343 = vector.shape_cast %342 : vector<1x8x128xi32> to vector<8x128xi32>
    %c28_166 = arith.constant 28 : index
    %344 = memref.load %arg3[%c28_166] : memref<30xf32, #tpu.memory_space<smem>>
    %c1_i32_167 = arith.constant 1 : i32
    %345 = vector.broadcast %c1_i32_167 : i32 to vector<8x128xi32>
    %346 = arith.cmpi eq, %343, %345 : vector<8x128xi32>
    %c29_168 = arith.constant 29 : index
    %347 = memref.load %arg3[%c29_168] : memref<30xf32, #tpu.memory_space<smem>>
    %348 = vector.broadcast %347 : f32 to vector<8x128xf32>
    %349 = vector.broadcast %344 : f32 to vector<8x128xf32>
    %350 = arith.select %346, %348, %349 : vector<8x128xi1>, vector<8x128xf32>
    %351 = arith.mulf %341, %350 : vector<8x128xf32>
    %352 = arith.addf %339, %351 : vector<8x128xf32>
    %c8_169 = arith.constant 8 : index
    %c0_170 = arith.constant 0 : index
    %353 = vector.load %arg5[%c8_169, %c0_170] : memref<16x128xf32, #tpu.memory_space<vmem>>, vector<8x128xf32>
    tpu.vector_store %arg5[%c8_169, %c0_170], %352 {strides = array<i32>} : memref<16x128xf32, #tpu.memory_space<vmem>>, vector<8x128xf32>,
    return
  }
  func.func @transform_0(%arg0: i32) -> (i32, i32, i32) {
    %c0_i32 = arith.constant 0 : i32
    %c0_i32_0 = arith.constant 0 : i32
    %c0_i32_1 = arith.constant 0 : i32
    return %c0_i32, %arg0, %c0_i32_0 : i32, i32, i32
  }
  func.func @transform_1(%arg0: i32) -> (i32, i32, i32) {
    %c0_i32 = arith.constant 0 : i32
    %c0_i32_0 = arith.constant 0 : i32
    %c0_i32_1 = arith.constant 0 : i32
    return %c0_i32, %arg0, %c0_i32_0 : i32, i32, i32
  }
  func.func @transform_2(%arg0: i32) -> i32 {
    %c0_i32 = arith.constant 0 : i32
    %c0_i32_0 = arith.constant 0 : i32
    return %c0_i32 : i32
  }
  func.func @transform_3(%arg0: i32) -> i32 {
    %c0_i32 = arith.constant 0 : i32
    %c0_i32_0 = arith.constant 0 : i32
    return %c0_i32 : i32
  }
  func.func @transform_4(%arg0: i32) -> (i32, i32) {
    %c0_i32 = arith.constant 0 : i32
    %c0_i32_0 = arith.constant 0 : i32
    return %arg0, %c0_i32 : i32, i32
  }
}

</mosaic_0001>

<bundles_post_ra>
// kernel: tpu_custom_call.1
= control target key start
LH: loop header
LB: loop body
LE: loop exit
PB: predicated region body
PF: predicated region fallthrough
CT: control target
= control target key end

     0   :  { %s1454_s0 = inlined_call_operand.hbm [shape: s32[6,48,128], index: 0, kind: input, shape index: {}]   ;;  %s1455_s1 = inlined_call_operand.hbm [shape: f32[12,48,128], index: 1, kind: input, shape index: {}]   ;;  %s1456_s2 = inlined_call_operand.vmem [shape: f32[30], index: 2, kind: input, shape index: {}]   ;;  %s1457_s3 = inlined_call_operand.<no memory space> [shape: f32[1], index: 3, kind: input, shape index: {}]   ;;  %s1458_s4 = inlined_call_operand.hbm [shape: f32[48,128], index: 4, kind: output, shape index: {}]  }
   0x1   :  { %9 = sst [smem:[#allocation2]] %s1457_s3 }
   0x2   :  { %10 = vsyncpa [#allocation4], 0 }
   0x3   :  { %12 = vsyncpa [#allocation4 + $0x1], 0 }
   0x4   :  { %13 = vsyncpa [#allocation8], 0 }
   0x5   :  { %15 = vsyncpa [#allocation8 + $0x1], 0 }
   0x6   :  { %16 = vsyncpa [#allocation6], 0 }
   0x7   :  { %17 = vsyncpa [#allocation5], 0 }
   0x8   :  { %19 = vsyncpa [#allocation5 + $0x1], 0  ;;  %s1076_s17 = smov 0   ;;  %s1078_s18 = smov 0  }
   0x9   :  { %s1080_s19 = smov 0   ;;  %s1082_s20 = smov 0  }
   0xa LB: > { %s1097_s3 = sadd.s32 4294967295, %s1030_s20   ;;  %s744_s21 = sadd.s32 4294967294, %s1030_s20   ;;  %s1030_s20 = sphi %s1082_s20, %s1472_s20   ;;  %s1026_s19 = sphi %s1080_s19, %s1471_s19   ;;  %s1022_s18 = sphi %s1078_s18, %s1470_s18   ;;  %s1018_s17 = sphi %s1076_s17, %s1469_s17  }
   0xb   : > { %s1101_s22 = sadd.s32 1, %s1030_s20   ;;  %s32_s23 = sadd.s32 1, %s1026_s19 }
   0xc   : > { %s29_s24 = ssub.s32 %s1030_s20, %s1101_s22  ;;  %p39_p0 = scmp.ne.s32.totalorder %s1026_s19, %s1022_s18 }
   0xd   : > { %p30_p1 = scmp.eq.s32.totalorder %s29_s24, 0  ;;  %p40_p2 = scmp.eq.s32.totalorder %s1030_s20, 0 }
   0xe   : > { %p45_p3 = scmp.ne.s32.totalorder %s1022_s18, %s1018_s17  ;;  %p46_p4 = scmp.eq.s32.totalorder %s1097_s3, 0 }
   0xf   : > { %s1113_s25 = scalar_select %p30_p1, %s1026_s19, %s32_s23  }
  0x10   : > { %p1115_p5 = por %p40_p2, %p39_p0  ;;  %p1121_p6 = por %p46_p4, %p45_p3 }
  0x11   : > { %p137_p7 = scmp.eq.s32.totalorder %s1097_s3, 2  ;;  %p143_p8 = scmp.eq.s32.totalorder %s744_s21, 2 }
  0x12   : > { %s1462_s27 = scalar_select %p1121_p6, 1, 0 }
  0x13   : > { %p745_p9 = scmp.ge.s32.totalorder %s1030_s20, 1  ;;  %p150_p10 = scmp.lt.s32.totalorder %s1030_s20, 4 }
  0x14   : > { %p1128_p11 = por %p137_p7, %p39_p0  ;;  %p1132_p12 = por %p143_p8, %p45_p3 }
  0x15   : > { %p1136_p13 = pnand %p745_p9, %p150_p10  ;;  %s163_s7 = sshll.u32 %s1456_s2, 4  ;;  %s164_s7 = int_to_ptr.vmem [resolvable:$true] %s163_s7 }
  0x16   : > { %s1463_s28 = scalar_select %p1128_p11, 1, 0 }
  0x17   : > { %s1464_s29 = scalar_select %p1132_p12, 1, 0 }
  0x18   : > { %p885_p1 = pneg %p1136_p13  ;;  %s943_s8 = scalar_lea.vmem %s164_s7, 16 }
  0x19   : > { %p944_p2 = scmp.ne.s32.totalorder %s164_s7, %s943_s8  ;;  %p951_p12 = scmp.lt.s32.totalorder %s164_s7, %s164_s7 }
  0x1a   : > { %p886_p0 = pnand %p885_p1, %p46_p4  ;;  %p952_p9 = scmp.lt.s32.totalorder %s943_s8, %s943_s8 }
  0x1c   : > { %p945_p3 = pneg %p886_p0  ;;  %p953_p10 = por %p952_p9, %p951_p12 }
  0x1e   : > { %p946_p7 = pnand %p945_p3, %p944_p2 }
  0x20   : > { %p947_p8 = pneg %p946_p7 }
  0x22   : > { %p954_p11 = pnand %p953_p10, %p947_p8 }
  0x24   : > { %957 = shalt.err (!%p954_p11)
}
  0x25   : > { %s1032_s9 = smov [#allocation9]   ;;  %p747_p6 = scmp.ge.s32.totalorder %s1030_s20, 3 }
  0x26   : > { %888 = dma.vmem_to_smem (!%p886_p0), %s164_s7, 16, %s1032_s9, [#allocation6]  }
  0x27   : > { %173 = sbr.rel (%p747_p6) target bundleno = 71 (0x47), region = 24 }
  0x2c   : > { %s1149_s10 = sand.u32 1, %s1026_s19   ;;  %s854_s12 = sshll.u32 %s1030_s20, 8 }
  0x2d   : > { %s857_s11 = smul.u32 96, %s1149_s10  ;;  %s1033_s13 = smov 768  }
  0x2e   : > { %864 = sst [smem:[#allocation12]] (%p1115_p5), %s1033_s13  ;;  %s187_s21 = scalar_lea.hbm %s1454_s0, %s854_s12 }
  0x2f   : > { %s863_s14 = scalar_select %p1115_p5, [#allocation0], [#allocation15] }
  0x30   : > { %s181_s24 = scalar_lea.vmem [#allocation3], %s857_s11  ;;  %s1034_s6 = smov 256  }
  0x31   : > { %s192_s23 = sld [smem:[%s863_s14]]   ;;  %s200_s5 = sshll.u32 %s181_s24, 4  ;;  %s201_s5 = int_to_ptr.vmem [resolvable:$true] %s200_s5 }
  0x32   : > { %865 = sst [smem:[#allocation12 + $0x1]] (%p1115_p5), %s1034_s6  ;;  %s1035_s7 = smov 2  }
  0x33   : > { %866 = sst [smem:[#allocation12 + $0x2]] (%p1115_p5), %s1035_s7  ;;  %s1036_s8 = smov 128  }
  0x34   : > { %867 = sst [smem:[#allocation12 + $0x3]] (%p1115_p5), %s1036_s8  ;;  %s1037_s9 = smov 8  }
  0x35   : > { %868 = sst [smem:[#allocation12 + $0x4]] (%p1115_p5), %s1036_s8  ;;  %s178_s11 = scalar_lea.sflag [#allocation4], %s1149_s10 }
  0x36   : > { %869 = sst [smem:[#allocation12 + $0x5]] (%p1115_p5), %s1037_s9  ;;  %s1038_s15 = smov 131072  }
  0x37   : > { %s750_s13 = sshll.u32 %s192_s23, 26 }
  0x38   : > { %s751_s14 = sadd.s32 134217728, %s750_s13 }
  0x39   : > { %870 = dma.general (%p1115_p5), %s187_s21, 1536, %s201_s5, %s178_s11, %s1038_s15, [#allocation12], %s751_s14, 0  }
  0x3a   : > { %s858_s16 = smul.u32 192, %s1149_s10  ;;  %s1039_s24 = smov 768  }
  0x3b   : > { %872 = sst [smem:[#allocation14]] (%p1115_p5), %s1039_s24  ;;  %s233_s8 = scalar_lea.hbm %s1455_s1, %s854_s12 }
  0x3c   : > { %s871_s6 = scalar_select %p1115_p5, [#allocation0], [#allocation16] }
  0x3d   : > { %s227_s5 = scalar_lea.vmem [#allocation7], %s858_s16  ;;  %s1040_s13 = smov 256  }
  0x3e   : > { %s238_s21 = sld [smem:[%s871_s6]]   ;;  %s246_s9 = sshll.u32 %s227_s5, 4  ;;  %s247_s9 = int_to_ptr.vmem [resolvable:$true] %s246_s9 }
  0x3f   : > { %873 = sst [smem:[#allocation14 + $0x1]] (%p1115_p5), %s1040_s13  ;;  %s1041_s14 = smov 2  }
  0x40   : > { %874 = sst [smem:[#allocation14 + $0x2]] (%p1115_p5), %s1041_s14  ;;  %s1042_s11 = smov 128  }
  0x41   : > { %875 = sst [smem:[#allocation14 + $0x3]] (%p1115_p5), %s1042_s11  ;;  %s1043_s15 = smov 8  }
  0x42   : > { %876 = sst [smem:[#allocation14 + $0x4]] (%p1115_p5), %s1042_s11  ;;  %s224_s16 = scalar_lea.sflag [#allocation8], %s1149_s10 }
  0x43   : > { %877 = sst [smem:[#allocation14 + $0x5]] (%p1115_p5), %s1043_s15  ;;  %s1044_s6 = smov 131072  }
  0x44   : > { %s754_s12 = sshll.u32 %s238_s21, 26 }
  0x45   : > { %s755_s24 = sadd.s32 134217728, %s754_s12 }
  0x46   : > { %878 = dma.general (%p1115_p5), %s233_s8, 3072, %s247_s9, %s224_s16, %s1044_s6, [#allocation14], %s755_s24, 0  }
  0x47 PF: > { %271 = sbr.rel (%p1136_p13) target bundleno = 150 (0x96), region = 36  ;;  %s1197_s23 = sand.u32 (!%p1136_p13), 1, %s1022_s18  }
  0x48   : > { %s859_s7 = smul.u32 (!%p1136_p13), 96, %s1197_s23  ;;  %s274_s5 = scalar_lea.sflag (!%p1136_p13), [#allocation4], %s1197_s23 }
  0x49   : > { %p1466_p6 = scmp.ne.s32.totalorder (!%p1136_p13), %s1462_s27, 0 }
  0x4a   : > { %s1201_s13 = scalar_lea.vmem (!%p1136_p13), [#allocation3], %s859_s7 }
  0x4c   : > { %1001 = dma.done.wait (%p1466_p6), %s274_s5, 1536  }
  0x4d   : > { %1003 = vsyncadd (%p1466_p6), %s274_s5, 4294965760  ;;  %s860_s26 = smul.u32 192, %s1197_s23  ;;  %s283_s30 = scalar_lea.sflag [#allocation8], %s1197_s23 }
  0x4f   : > { %s1209_s10 = scalar_lea.vmem [#allocation7], %s860_s26 }
  0x50   : > { %1005 = dma.done.wait (%p1466_p6), %s283_s30, 3072  }
  0x51   : > { %1007 = vsyncadd (%p1466_p6), %s283_s30, 4294964224 }
  0x52   : > { %1009 = dma.done.wait (%p46_p4), [#allocation6], 16  }
  0x53   : > { %1011 = vsyncadd (%p46_p4), [#allocation6], 4294967280 }
  0x54   : > { %295 = sfence }
  0x55   : > { %s1219_s8 = sld [smem:[#allocation2]]  ;;  %v327_v0 = vld [vmem:[%s1201_s13] sm:$0xff]  ;;  %v1231_v1 = vld [vmem:[%s1201_s13 + $0x10] sm:$0xff]  ;;  %v484_v6 = vld [vmem:[%s1201_s13 + $0x8] sm:$0xff]  ;;  %p1467_p5 = scmp.ne.s32.totalorder %s1463_s28, 0 }
  0x56   : > { %s1221_s21 = sld [smem:[#allocation9]]  ;;  %vm329_vm0 = vcmp.eq.s32.totalorder %v327_v0, 1  ;;  %vm334_vm1 = vcmp.eq.s32.totalorder %v327_v0, 2  ;;  %vm338_vm2 = vcmp.eq.s32.totalorder %v327_v0, 3  ;;  %vm342_vm3 = vcmp.eq.s32.totalorder %v327_v0, 4  ;;  %v326_v10 = vld [vmem:[%s1209_s10] sm:$0xff] }
  0x57   : > { %s1223_s9 = sld [smem:[#allocation9 + $0x1]]  ;;  %vm346_vm4 = vcmp.eq.s32.totalorder %v327_v0, 5  ;;  %vm357_vm5 = vcmp.eq.s32.totalorder %v1231_v1, 1  ;;  %vm362_vm6 = vcmp.eq.s32.totalorder %v1231_v1, 2  ;;  %vm366_vm7 = vcmp.eq.s32.totalorder %v1231_v1, 3  ;;  %v1266_v13 = vld [vmem:[%s1201_s13 + $0x20] sm:$0xff] }
  0x58   : > { %s1226_s27 = sld [smem:[#allocation9 + $0x2]]  ;;  %vm370_vm8 = vcmp.eq.s32.totalorder %v1231_v1, 4  ;;  %vm374_vm9 = vcmp.eq.s32.totalorder %v1231_v1, 5  ;;  %vm378_vm10 = vcmp.eq.s32.totalorder %v1231_v1, 6  ;;  %vm382_vm11 = vcmp.eq.s32.totalorder %v1231_v1, 7  ;;  %v1274_v18 = vld [vmem:[%s1201_s13 + $0x18] sm:$0xff] }
  0x59   : > { %s1228_s14 = sld [smem:[#allocation9 + $0x3]]  ;;  %vm486_vm12 = vcmp.eq.s32.totalorder %v484_v6, 1  ;;  %vm386_vm13 = vcmp.eq.s32.totalorder %v1231_v1, 8  ;;  %vm491_vm14 = vcmp.eq.s32.totalorder %v484_v6, 2  ;;  %vm390_vm15 = vcmp.eq.s32.totalorder %v1231_v1, 9  ;;  %v483_v21 = vld [vmem:[%s1209_s10 + $0x8] sm:$0xff] }
  0x5a   : > { %s1233_s11 = sld [smem:[#allocation9 + $0x4]]  ;;  %v764_v45 = vld [vmem:[%s1209_s10 + $0x10] sm:$0xff]  ;;  %v822_v52 = vld [vmem:[%s1201_s13 + $0x28] sm:$0xff]  ;;  %v776_v54 = vld [vmem:[%s1209_s10 + $0x20] sm:$0xff] }
  0x5b   : > { %s1235_s15 = sld [smem:[#allocation9 + $0x5]]  ;;  %v325_v7 = vstv %s1219_s8  ;;  %v780_v56 = vld [vmem:[%s1209_s10 + $0x30] sm:$0xff]  ;;  %v782_v63 = vld [vmem:[%s1209_s10 + $0x40] sm:$0xff]  ;;  %v809_v1 = vld [vmem:[%s1209_s10 + $0x18] sm:$0xff] }
  0x5c   : > { %v332_v2 = vstv %s1221_s21  ;;  %s1238_s12 = sld [smem:[#allocation9 + $0x6]]  ;;  %v789_v0 = vld [vmem:[%s1201_s13 + $0x30] sm:$0xff] }
  0x5d   : > { %v331_v3 = vstv %s1223_s9  ;;  %s1242_s24 = sld [smem:[#allocation9 + $0x7]] }
  0x5e   : > { %v333_v4 = vsel %vm329_vm0, %v331_v3, %v332_v2  ;;  %v336_v5 = vstv %s1226_s27  ;;  %s1248_s16 = sld [smem:[#allocation9 + $0x8]]  ;;  %v490_v14 = vsel %vm486_vm12, %v331_v3, %v332_v2  ;;  %vm495_vm0 = vcmp.eq.s32.totalorder %v484_v6, 3 }
  0x5f   : > { %v337_v8 = vsel %vm334_vm1, %v336_v5, %v333_v4  ;;  %v340_v9 = vstv %s1228_s14  ;;  %s1256_s6 = sld [smem:[#allocation9 + $0x9]]  ;;  %v494_v17 = vsel %vm491_vm14, %v336_v5, %v490_v14  ;;  %vm499_vm1 = vcmp.eq.s32.totalorder %v484_v6, 4 }
  0x60   : > { %v341_v11 = vsel %vm338_vm2, %v340_v9, %v337_v8  ;;  %v344_v12 = vstv %s1233_s11  ;;  %s1262_s7 = sld [smem:[#allocation9 + $0xa]]  ;;  %v498_v22 = vsel %vm495_vm0, %v340_v9, %v494_v17  ;;  %vm401_vm2 = vcmp.eq.s32.totalorder %v1266_v13, 1  ;;  %v784_v8 = vld [vmem:[%s1209_s10 + $0x50] sm:$0xff] }
  0x61   : > { %v345_v15 = vsel %vm342_vm3, %v344_v12, %v341_v11  ;;  %v348_v16 = vstv %s1235_s15  ;;  %s1270_s5 = sld [smem:[#allocation9 + $0xb]]  ;;  %v502_v25 = vsel %vm499_vm1, %v344_v12, %v498_v22  ;;  %vm503_vm3 = vcmp.eq.s32.totalorder %v484_v6, 5 }
  0x62   : > { %v349_v19 = vsel %vm346_vm4, %v348_v16, %v345_v15  ;;  %v360_v20 = vstv %s1238_s12  ;;  %s1278_s26 = sld [smem:[#allocation9 + $0xc]]  ;;  %v506_v28 = vsel %vm503_vm3, %v348_v16, %v502_v25  ;;  %vm512_vm4 = vcmp.eq.s32.totalorder %v1274_v18, 1  ;;  %v825_v15 = vld [vmem:[%s1209_s10 + $0x38] sm:$0xff]  ;;  %v786_v16 = vld [vmem:[%s1209_s10 + $0x60] sm:$0xff] }
  0x63   : > { %v350_v23 = vmul.f32 %v349_v19, %v326_v10  ;;  %v359_v24 = vstv %s1242_s24  ;;  %s1282_s30 = sld [smem:[#allocation9 + $0xd]]  ;;  %v507_v32 = vmul.f32 %v506_v28, %v483_v21  ;;  %vm545_vm12 = vcmp.eq.s32.totalorder %v1274_v18, 9  ;;  %v788_v28 = vld [vmem:[%s1209_s10 + $0x70] sm:$0xff] }
  0x64   : > { %v361_v26 = vsel %vm357_vm5, %v359_v24, %v360_v20  ;;  %v364_v27 = vstv %s1248_s16  ;;  %s1288_s8 = sld [smem:[#allocation9 + $0xe]]  ;;  %v516_v35 = vsel %vm512_vm4, %v359_v24, %v360_v20  ;;  %vm517_vm5 = vcmp.eq.s32.totalorder %v1274_v18, 2  ;;  %v797_v20 = vld [vmem:[%s1201_s13 + $0x40] sm:$0xff]  ;;  %v801_v24 = vld [vmem:[%s1201_s13 + $0x50] sm:$0xff] }
  0x65   : > { %v351_v29 = vadd.f32 %v350_v23, %v325_v7  ;;  %v365_v30 = vsel %vm362_vm6, %v364_v27, %v361_v26  ;;  %v368_v31 = vstv %s1256_s6  ;;  %s1294_s21 = sld [smem:[#allocation9 + $0xf]]  ;;  %v1307_v38 = vadd.f32 %v507_v32, %v325_v7  ;;  %v821_v7 = vld [vmem:[%s1209_s10 + $0x28] sm:$0xff] }
  0x66   : > { %v369_v33 = vsel %vm366_vm7, %v368_v31, %v365_v30  ;;  %v372_v34 = vstv %s1262_s7  ;;  %s1299_s9 = sld [smem:[#allocation9 + $0x10]]  ;;  %v520_v39 = vsel %vm517_vm5, %v364_v27, %v516_v35  ;;  %vm521_vm6 = vcmp.eq.s32.totalorder %v1274_v18, 3  ;;  %v827_v26 = vld [vmem:[%s1209_s10 + $0x48] sm:$0xff]  ;;  %v834_v27 = vld [vmem:[%s1201_s13 + $0x38] sm:$0xff] }
  0x67   : > { %v373_v36 = vsel %vm370_vm8, %v372_v34, %v369_v33  ;;  %v376_v37 = vstv %s1270_s5  ;;  %s1305_s27 = sld [smem:[#allocation9 + $0x11]]  ;;  %vm525_vm7 = vcmp.eq.s32.totalorder %v1274_v18, 4  ;;  %v524_v44 = vsel %vm521_vm6, %v368_v31, %v520_v39  ;;  %v792_v33 = vld [vmem:[%s1209_s10 + $0x80] sm:$0xff]  ;;  %v829_v35 = vld [vmem:[%s1209_s10 + $0x58] sm:$0xff] }
  0x68   : > { %v377_v40 = vsel %vm374_vm9, %v376_v37, %v373_v36  ;;  %v380_v41 = vstv %s1278_s26  ;;  %s1312_s14 = sld [smem:[#allocation9 + $0x12]]  ;;  %vm529_vm8 = vcmp.eq.s32.totalorder %v1274_v18, 5  ;;  %v528_v48 = vsel %vm525_vm7, %v372_v34, %v524_v44  ;;  %v794_v44 = vld [vmem:[%s1209_s10 + $0x90] sm:$0xff] }
  0x69   : > { %v381_v42 = vsel %vm378_vm10, %v380_v41, %v377_v40  ;;  %v384_v43 = vstv %s1282_s30  ;;  %s1319_s11 = sld [smem:[#allocation9 + $0x13]]  ;;  %vm533_vm9 = vcmp.eq.s32.totalorder %v1274_v18, 6  ;;  %v532_v51 = vsel %vm529_vm8, %v376_v37, %v528_v48 }
  0x6a   : > { %v385_v46 = vsel %vm382_vm11, %v384_v43, %v381_v42  ;;  %v388_v47 = vstv %s1288_s8  ;;  %s1326_s15 = sld [smem:[#allocation9 + $0x14]]  ;;  %vm537_vm10 = vcmp.eq.s32.totalorder %v1274_v18, 7  ;;  %v536_v57 = vsel %vm533_vm9, %v380_v41, %v532_v51  ;;  %v831_v42 = vld [vmem:[%s1209_s10 + $0x68] sm:$0xff]  ;;  %v833_v51 = vld [vmem:[%s1209_s10 + $0x78] sm:$0xff] }
  0x6b   : > { %v389_v49 = vsel %vm386_vm13, %v388_v47, %v385_v46  ;;  %v392_v50 = vstv %s1294_s21  ;;  %s1332_s12 = sld [smem:[#allocation9 + $0x15]]  ;;  %vm541_vm11 = vcmp.eq.s32.totalorder %v1274_v18, 8  ;;  %v540_v60 = vsel %vm537_vm10, %v384_v43, %v536_v57  ;;  %s758_s21 = sshll.u32 %s1197_s23, 4 }
  0x6c   : > { %v393_v53 = vsel %vm390_vm15, %v392_v50, %v389_v49  ;;  %v404_v55 = vstv %s1299_s9  ;;  %s1341_s24 = sld [smem:[#allocation9 + $0x16]]  ;;  %v544_v2 = vsel %vm541_vm11, %v388_v47, %v540_v60  ;;  %vm554_vm13 = vcmp.eq.s32.totalorder %v822_v52, 1  ;;  %v837_v60 = vld [vmem:[%s1209_s10 + $0x88] sm:$0xff]  ;;  %s320_s9 = scalar_lea.vmem [#allocation10], %s758_s21 }
  0x6d   : > { %v394_v58 = vmul.f32 %v764_v45, %v393_v53  ;;  %v403_v59 = vstv %s1305_s27  ;;  %s1345_s16 = sld [smem:[#allocation9 + $0x17]]  ;;  %v548_v10 = vsel %vm545_vm12, %v392_v50, %v544_v2  ;;  %vm437_vm14 = vcmp.eq.s32.totalorder %v789_v0, 1  ;;  %v842_v53 = vld [vmem:[%s1201_s13 + $0x48] sm:$0xff]  ;;  %s636_s27 = sshll.u32 %s320_s9, 4  ;;  %s1412_s27 = int_to_ptr.vmem [resolvable:$true] %s636_s27 }
  0x6e   : > { %v405_v61 = vsel %vm401_vm2, %v403_v59, %v404_v55  ;;  %v411_v62 = vstv %s1312_s14  ;;  %s1353_s6 = sld [smem:[#allocation9 + $0x18]]  ;;  %v558_v11 = vsel %vm554_vm13, %v403_v59, %v404_v55  ;;  %v549_v14 = vmul.f32 %v809_v1, %v548_v10 }
  0x6f   : > { %v395_v3 = vadd.f32 %v394_v58, %v351_v29  ;;  %v406_v4 = vmul.f32 %v776_v54, %v405_v61  ;;  %v412_v5 = vmul.f32 %v780_v56, %v411_v62  ;;  %v417_v6 = vstv %s1319_s11  ;;  %s1357_s7 = sld [smem:[#allocation9 + $0x19]]  ;;  %v796_v54 = vld [vmem:[%s1209_s10 + $0xa0] sm:$0xff]  ;;  %v846_v61 = vld [vmem:[%s1201_s13 + $0x58] sm:$0xff]  ;;  %s856_s13 = sshll.u32 %s1097_s3, 8 }
  0x70   : > { %v423_v9 = vstv %s1326_s15  ;;  %s1362_s5 = sld [smem:[#allocation9 + $0x1a]]  ;;  %v418_v13 = vmul.f32 %v782_v63, %v417_v6  ;;  %v559_v18 = vmul.f32 %v821_v7, %v558_v11  ;;  %v550_v25 = vadd.f32 %v549_v14, %v1307_v38  ;;  %v845_v14 = vld [vmem:[%s1209_s10 + $0xb8] sm:$0xff]  ;;  %s1410_s15 = scalar_lea.hbm %s1458_s4, %s856_s13 }
  0x71   : > { %v407_v12 = vadd.f32 %v406_v4, %v395_v3  ;;  %s1366_s26 = sld [smem:[#allocation9 + $0x1b]]  ;;  %v429_v17 = vstv %s1332_s12  ;;  %v424_v22 = vmul.f32 %v784_v8, %v423_v9  ;;  %v564_v30 = vmul.f32 %v825_v15, %v411_v62  ;;  %v800_v62 = vld [vmem:[%s1209_s10 + $0xb0] sm:$0xff]  ;;  %v839_v4 = vld [vmem:[%s1209_s10 + $0x98] sm:$0xff]  ;;  %s958_s12 = scalar_lea.vmem %s1412_s27, 256 }
  0x72   : > { %v440_v19 = vstv %s1341_s24  ;;  %s1373_s30 = sld [smem:[#allocation9 + $0x1c]]  ;;  %v430_v32 = vmul.f32 %v786_v16, %v429_v17  ;;  %vm461_vm15 = vcmp.eq.s32.totalorder %v797_v20, 1  ;;  %vm473_vm0 = vcmp.eq.s32.totalorder %v801_v24, 1  ;;  %p959_p4 = scmp.ne.s32.totalorder %s1412_s27, %s958_s12 }
  0x73   : > { %v413_v21 = vadd.f32 %v412_v5, %v407_v12  ;;  %v439_v23 = vstv %s1345_s16  ;;  %s1377_s8 = sld [smem:[#allocation9 + $0x1d]]  ;;  %v560_v36 = vadd.f32 %v559_v18, %v550_v25  ;;  %v569_v37 = vmul.f32 %v827_v26, %v417_v6  ;;  %s1045_s3 = smov [#allocation10]  }
  0x74   : > { %v441_v29 = vsel %vm437_vm14, %v439_v23, %v440_v19  ;;  %v447_v34 = vstv %s1353_s6  ;;  %vm584_vm1 = vcmp.eq.s32.totalorder %v834_v27, 1  ;;  %v574_v47 = vmul.f32 %v829_v35, %v423_v9  ;;  %v841_v9 = vld [vmem:[%s1209_s10 + $0xa8] sm:$0xff]  ;;  %s623_s10 = scalar_lea.sflag [#allocation5], %s1197_s23  ;;  %p960_p11 = pnand %p959_p4, %p1467_p5 }
  0x75   : > { %v419_v31 = vadd.f32 %v418_v13, %v413_v21  ;;  %v442_v39 = vmul.f32 %v788_v28, %v441_v29  ;;  %v448_v43 = vmul.f32 %v792_v33, %v447_v34  ;;  %v453_v45 = vstv %s1357_s7  ;;  %s962_s24 = sshll.u32 %s1045_s3, 4  ;;  %s963_s24 = int_to_ptr.vmem [resolvable:$false] %s962_s24 }
  0x76   : > { %v464_v41 = vstv %s1362_s5  ;;  %v565_v46 = vadd.f32 %v564_v30, %v560_v36  ;;  %v588_v52 = vsel %vm584_vm1, %v439_v23, %v440_v19  ;;  %v579_v57 = vmul.f32 %v831_v42, %v429_v17  ;;  %p961_p12 = pneg %p960_p11  ;;  %s964_s16 = scalar_lea.vmem %s963_s24, 512 }
  0x77   : > { %v425_v38 = vadd.f32 %v424_v22, %v419_v31  ;;  %v463_v40 = vstv %s1366_s26  ;;  %v454_v59 = vmul.f32 %v794_v44, %v453_v45  ;;  %v589_v1 = vmul.f32 %v833_v51, %v588_v52  ;;  %p965_p13 = scmp.lt.s32.totalorder %s1412_s27, %s963_s24  ;;  %p966_p1 = scmp.lt.s32.totalorder %s964_s16, %s958_s12 }
  0x78   : > { %v476_v50 = vstv %s1373_s30  ;;  %v465_v55 = vsel %vm461_vm15, %v463_v40, %v464_v41  ;;  %v570_v56 = vadd.f32 %v569_v37, %v565_v46  ;;  %vm604_vm2 = vcmp.eq.s32.totalorder %v842_v53, 1 }
  0x79   : > { %v431_v48 = vadd.f32 %v430_v32, %v425_v38  ;;  %v475_v49 = vstv %s1377_s8  ;;  %v466_v3 = vmul.f32 %v796_v54, %v465_v55  ;;  %v594_v6 = vmul.f32 %v837_v60, %v447_v34  ;;  %p967_p0 = por %p966_p1, %p965_p13 }
  0x7a   : > { %v477_v63 = vsel %vm473_vm0, %v475_v49, %v476_v50  ;;  %v575_v0 = vadd.f32 %v574_v47, %v570_v56  ;;  %vm614_vm3 = vcmp.eq.s32.totalorder %v846_v61, 1  ;;  %v608_v10 = vsel %vm604_vm2, %v463_v40, %v464_v41 }
  0x7b   : > { %v443_v58 = vadd.f32 %v442_v39, %v431_v48  ;;  %v478_v8 = vmul.f32 %v800_v62, %v477_v63  ;;  %v599_v12 = vmul.f32 %v839_v4, %v453_v45  ;;  %v618_v15 = vsel %vm614_vm3, %v475_v49, %v476_v50  ;;  %p968_p2 = pnand %p967_p0, %p961_p12 }
  0x7c   : > { %v580_v5 = vadd.f32 %v579_v57, %v575_v0  ;;  %v609_v17 = vmul.f32 %v841_v9, %v608_v10  ;;  %v619_v18 = vmul.f32 %v845_v14, %v618_v15 }
  0x7d   : > { %v449_v2 = vadd.f32 %v448_v43, %v443_v58 }
  0x7e   : > { %v590_v11 = vadd.f32 %v589_v1, %v580_v5 }
  0x7f   : > { %v455_v7 = vadd.f32 %v454_v59, %v449_v2 }
  0x80   : > { %v595_v16 = vadd.f32 %v594_v6, %v590_v11 }
  0x81   : > { %v467_v13 = vadd.f32 %v466_v3, %v455_v7 }
  0x82   : > { %v600_v20 = vadd.f32 %v599_v12, %v595_v16 }
  0x83   : > { %v479_v19 = vadd.f32 %v478_v8, %v467_v13 }
  0x84   : > { %v610_v21 = vadd.f32 %v609_v17, %v600_v20 }
  0x85   : > { %480 = vst [vmem:[%s320_s9] sm:$0xff] %v479_v19 }
  0x86   : > { %v620_v22 = vadd.f32 %v619_v18, %v610_v21 }
  0x88   : > { %621 = vst [vmem:[%s320_s9 + $0x8] sm:$0xff] %v620_v22 }
  0x89   : > { %971 = shalt.err (!%p968_p2)
}
  0x8a   : > { %s972_s6 = scalar_lea.hbm %s1410_s15, 256  ;;  %s976_s26 = scalar_lea.hbm %s1458_s4, 768 }
  0x8b   : > { %p973_p3 = scmp.ne.s32.totalorder %s1410_s15, %s972_s6  ;;  %p977_p9 = scmp.lt.s32.totalorder %s1410_s15, %s1458_s4 }
  0x8c   : > { %p978_p10 = scmp.lt.s32.totalorder %s976_s26, %s972_s6 }
  0x8d   : > { %p974_p7 = pnand %p973_p3, %p1467_p5 }
  0x8e   : > { %p979_p6 = por %p978_p10, %p977_p9 }
  0x8f   : > { %p975_p8 = pneg %p974_p7 }
  0x91   : > { %p980_p4 = pnand %p979_p6, %p975_p8 }
  0x93   : > { %983 = shalt.err (!%p980_p4)
}
  0x94   : > { %s1046_s21 = smov 128   ;;  %s1047_s13 = smov 8  }
  0x95   : > { %883 = dma.vmem_to_hbm [thread:$0]  (%p1467_p5), %s1412_s27, 256, %s1410_s15, %s623_s10, %s1046_s21, %s1046_s21, %s1047_s13  }
  0x96 PF: > { %p895_p11 = scmp.ge.s32.totalorder %s1030_s20, 2  ;;  %s651_s9 = sand.u32 1, %s1018_s17  }
  0x97   : > { %p1468_p12 = scmp.ne.s32.totalorder %s1464_s29, 0  ;;  %s652_s14 = scalar_lea.sflag [#allocation5], %s651_s9 }
  0x99   : > { %p890_p13 = pnand %p895_p11, %p1468_p12 }
  0x9b   : > { %p891_p1 = pneg %p890_p13 }
  0x9d   : > { %1013 = dma.done.wait (%p891_p1), %s652_s14, 256  }
  0x9e   : > { %1015 = vsyncadd (%p891_p1), %s652_s14, 4294967040  ;;  %p22_p0 = scmp.ge.s32.totalorder %s1101_s22, 5   ;;  %s1469_s17 = smov %s1022_s18 }
  0x9f   : > { %s1470_s18 = smov %s1026_s19  ;;  %s1471_s19 = smov %s1113_s25 }
  0xa0   : > { %s1472_s20 = smov %s1101_s22  ;;  %24 = sbr.rel (!%p22_p0) target bundleno = 10 (0xa), region = 125 }
  0xa5   :  { %657 = vsyncpa [#allocation4], 1 }
  0xa6   :  { %659 = vsyncpa [#allocation4 + $0x1], 1 }
  0xa7   :  { %660 = vsyncpa [#allocation8], 1 }
  0xa8   :  { %662 = vsyncpa [#allocation8 + $0x1], 1 }
  0xa9   :  { %663 = vsyncpa [#allocation5], 1 }
  0xaa   :  { %665 = vsyncpa [#allocation5 + $0x1], 1 }
  0xab   :  { %666 = vsyncpa [#allocation6], 1 }
  0xac   :  { %668 = vsyncpa [#allocation6 + $0x1], 1 }

</bundles_post_ra>
